<compile_context>
chip_gen: v5e
topology: v5e:2x2
jax: 0.10.0
libtpu: 0.0.40
codegen_flags: <defaults>
</compile_context>

<pallas_src>
import jax
import jax.numpy as jnp
from jax.experimental import pallas as pl
from jax.experimental.pallas import tpu as pltpu


def _se_kernel(x_ref, w1t_ref, w2t_ref, o_ref):
    # x_ref:   (TB, C, HW)  TB batch elements
    # w1t_ref: (C, Cr)      fc1 weight, pre-transposed + pre-cast (resident)
    # w2t_ref: (Cr, C)      fc2 weight, pre-transposed + pre-cast (resident)
    x = x_ref[...]                                            # native dtype

    # Squeeze: global average pool over the spatial axis, f32 accumulation.
    y = jnp.mean(x.astype(jnp.float32), axis=-1)              # (TB, C)

    # Excitation: batched fc1 -> ReLU -> fc2 -> Sigmoid (MXU + EUP).
    h = jnp.dot(y, w1t_ref[...], preferred_element_type=jnp.float32)   # (TB, Cr)
    h = jnp.maximum(h, 0.0)
    s = jnp.dot(h, w2t_ref[...], preferred_element_type=jnp.float32)   # (TB, C)
    s = jax.nn.sigmoid(s)

    # Scale: keep the dominant multiply in the input dtype (cast the tiny gate
    # down instead of up-casting the whole x tile).
    o_ref[...] = (x * s[:, :, None].astype(x.dtype)).astype(o_ref.dtype)


def _pick_batch_tile(B, slab_bytes, budget_bytes):
    """Largest divisor of B whose double-buffered in+out tiles fit the budget,
    while leaving >= 2 grid steps (megacore) whenever B >= 2."""
    tb_max = max(1, budget_bytes // (4 * slab_bytes))  # 2x in + 2x out buffers
    best = 1
    for cand in range(1, B + 1):
        if B % cand != 0 or cand > tb_max:
            continue
        if B >= 2 and (B // cand) < 2:
            continue
        best = cand
    return best


def se_layer(x, w1, w2):
    """x: (B, C, H, W) NCHW.  w1: (Cr, C), w2: (C, Cr) (PyTorch Linear layout)."""
    B, C, H, W = x.shape
    Cr = w1.shape[0]
    HW = H * W
    x_flat = x.reshape(B, C, HW)                      # free view, no HBM traffic

    # Hoist weight transposes + dtype casts out of the kernel (weights are
    # resident across the whole grid).
    compute_dtype = jnp.float32
    w1t = jnp.transpose(w1).astype(compute_dtype)     # (C, Cr)
    w2t = jnp.transpose(w2).astype(compute_dtype)     # (Cr, C)

    # Batch-tile sizing: big tiles for the mem-bound path, but keep >= 2 grid
    # steps and stay inside a conservative VMEM tile budget (fits the v5e
    # default scoped limit; well under v7x's 64 MiB physical VMEM).
    itemsize = jnp.dtype(x.dtype).itemsize
    slab = C * HW * itemsize                          # one batch element
    TILE_BUDGET = 12 * 1024 * 1024
    TB = _pick_batch_tile(B, slab, TILE_BUDGET)
    # TODO(synk): for very large C*HW (slab > budget even at TB=1), switch to a
    # two-pass plan (pool+gate kernel, then scale kernel) tiled over HW.

    vmem_limit = 32 * 1024 * 1024                     # tiles + weights + headroom

    out_flat = pl.pallas_call(
        _se_kernel,
        out_shape=jax.ShapeDtypeStruct((B, C, HW), x.dtype),
        grid_spec=pltpu.PrefetchScalarGridSpec(
            num_scalar_prefetch=0,
            grid=(B // TB,),
            in_specs=[
                pl.BlockSpec((TB, C, HW), lambda b: (b, 0, 0)),  # batch slab
                pl.BlockSpec((C, Cr), lambda b: (0, 0)),         # resident weight
                pl.BlockSpec((Cr, C), lambda b: (0, 0)),         # resident weight
            ],
            out_specs=pl.BlockSpec((TB, C, HW), lambda b: (b, 0, 0)),
        ),
        compiler_params=pltpu.CompilerParams(
            dimension_semantics=("parallel",),
            vmem_limit_bytes=vmem_limit,
        ),
    )(x_flat, w1t, w2t)

    return out_flat.reshape(B, C, H, W)


def se_layer_ref(x, w1, w2):
    """Pure-JAX reference of the PyTorch forward (for verification)."""
    y = jnp.mean(x.astype(jnp.float32), axis=(2, 3))            # (B, C)
    h = jnp.maximum(y @ w1.T.astype(jnp.float32), 0.0)          # (B, Cr)
    s = jax.nn.sigmoid(h @ w2.T.astype(jnp.float32))            # (B, C)
    return (x * s[:, :, None, None].astype(x.dtype)).astype(x.dtype)


if __name__ == "__main__":
    # Small, module-consistent shapes: channel=64, reduction=16 -> hidden=4.
    B, C, H, W = 2, 64, 8, 8
    reduction = 16
    Cr = C // reduction

    key = jax.random.PRNGKey(0)
    kx, k1, k2 = jax.random.split(key, 3)
    x = jax.random.normal(kx, (B, C, H, W), dtype=jnp.float32)
    # Deterministic synthetic weights (PyTorch Linear layout: out x in).
    w1 = jax.random.normal(k1, (Cr, C), dtype=jnp.float32) * 0.1
    w2 = jax.random.normal(k2, (C, Cr), dtype=jnp.float32) * 0.1

    out = se_layer(x, w1, w2)
    out = jax.block_until_ready(out)

    ref = se_layer_ref(x, w1, w2)
    assert out.shape == (B, C, H, W)
    assert jnp.allclose(out, ref, atol=1e-5, rtol=1e-5), "mismatch vs reference"

    print("KERNEL_OK")
</pallas_src>

<mosaic_0001>
module attributes {stable_mosaic.version = 11 : i64} {
  func.func @_se_kernel(%arg0: i32, %arg1: memref<1x64x64xf32, #tpu.memory_space<vmem>>, %arg2: memref<64x4xf32, #tpu.memory_space<vmem>>, %arg3: memref<4x64xf32, #tpu.memory_space<vmem>>, %arg4: memref<1x64x64xf32, #tpu.memory_space<vmem>>) attributes {dimension_semantics = [#tpu.dimension_semantics<parallel>], iteration_bounds = array<i64: 2>, scalar_prefetch = 0 : i64, scratch_operands = 0 : i64, tpu.core_type = #tpu.core_type<tc>, window_params = [{transform_indices = @transform_0, window_bounds = array<i64: 1, 64, 64>}, {pipeline_mode = #tpu.pipeline_mode<synchronous>, transform_indices = @transform_1, window_bounds = array<i64: 64, 4>}, {pipeline_mode = #tpu.pipeline_mode<synchronous>, transform_indices = @transform_2, window_bounds = array<i64: 4, 64>}, {transform_indices = @transform_3, window_bounds = array<i64: 1, 64, 64>}]} {
    %c0 = arith.constant 0 : index
    %c0_0 = arith.constant 0 : index
    %c0_1 = arith.constant 0 : index
    %0 = vector.load %arg1[%c0, %c0_0, %c0_1] : memref<1x64x64xf32, #tpu.memory_space<vmem>>, vector<1x64x64xf32>
    %cst = arith.constant dense<0.000000e+00> : vector<1x64xf32>
    %1 = vector.multi_reduction <add>, %0, %cst [2] : vector<1x64x64xf32> to vector<1x64xf32>
    %cst_2 = arith.constant 6.400000e+01 : f32
    %2 = vector.broadcast %cst_2 : f32 to vector<1x64xf32>
    %3 = arith.divf %1, %2 : vector<1x64xf32>
    %c0_3 = arith.constant 0 : index
    %c0_4 = arith.constant 0 : index
    %4 = vector.load %arg2[%c0_3, %c0_4] : memref<64x4xf32, #tpu.memory_space<vmem>>, vector<64x4xf32>
    %cst_5 = arith.constant dense<0.000000e+00> : vector<1x4xf32>
    %5 = tpu.matmul %3, %4, %cst_5 {dimension_numbers = #tpu.dot_dimension_numbers<[1], [0], [0], [1], [0, 0, 1, 1], [], []>} : vector<1x64xf32>, vector<64x4xf32>, vector<1x4xf32> -> vector<1x4xf32>
    %cst_6 = arith.constant 0.000000e+00 : f32
    %6 = vector.broadcast %cst_6 : f32 to vector<1x4xf32>
    %7 = arith.maximumf %5, %6 : vector<1x4xf32>
    %c0_7 = arith.constant 0 : index
    %c0_8 = arith.constant 0 : index
    %8 = vector.load %arg3[%c0_7, %c0_8] : memref<4x64xf32, #tpu.memory_space<vmem>>, vector<4x64xf32>
    %cst_9 = arith.constant dense<0.000000e+00> : vector<1x64xf32>
    %9 = tpu.matmul %7, %8, %cst_9 {dimension_numbers = #tpu.dot_dimension_numbers<[1], [0], [0], [1], [0, 0, 1, 1], [], []>} : vector<1x4xf32>, vector<4x64xf32>, vector<1x64xf32> -> vector<1x64xf32>
    %10 = arith.negf %9 : vector<1x64xf32>
    %11 = math.exp %10 : vector<1x64xf32>
    %cst_10 = arith.constant 1.000000e+00 : f32
    %12 = vector.broadcast %cst_10 : f32 to vector<1x64xf32>
    %13 = arith.addf %12, %11 : vector<1x64xf32>
    %14 = arith.divf %12, %13 : vector<1x64xf32>
    %15 = vector.shape_cast %14 : vector<1x64xf32> to vector<1x64x1xf32>
    %16 = vector.broadcast %15 : vector<1x64x1xf32> to vector<1x64x64xf32>
    %17 = arith.mulf %0, %16 : vector<1x64x64xf32>
    %c0_11 = arith.constant 0 : index
    %c0_12 = arith.constant 0 : index
    %c0_13 = arith.constant 0 : index
    %18 = vector.load %arg4[%c0_11, %c0_12, %c0_13] : memref<1x64x64xf32, #tpu.memory_space<vmem>>, vector<1x64x64xf32>
    tpu.vector_store %arg4[%c0_11, %c0_12, %c0_13], %17 {strides = array<i32>} : memref<1x64x64xf32, #tpu.memory_space<vmem>>, vector<1x64x64xf32>,
    return
  }
  func.func @transform_0(%arg0: i32) -> (i32, i32, i32) {
    %c0_i32 = arith.constant 0 : i32
    %c0_i32_0 = arith.constant 0 : i32
    %c0_i32_1 = arith.constant 0 : i32
    return %arg0, %c0_i32, %c0_i32_0 : i32, i32, i32
  }
  func.func @transform_1(%arg0: i32) -> (i32, i32) {
    %c0_i32 = arith.constant 0 : i32
    %c0_i32_0 = arith.constant 0 : i32
    %c0_i32_1 = arith.constant 0 : i32
    return %c0_i32, %c0_i32_0 : i32, i32
  }
  func.func @transform_2(%arg0: i32) -> (i32, i32) {
    %c0_i32 = arith.constant 0 : i32
    %c0_i32_0 = arith.constant 0 : i32
    %c0_i32_1 = arith.constant 0 : i32
    return %c0_i32, %c0_i32_0 : i32, i32
  }
  func.func @transform_3(%arg0: i32) -> (i32, i32, i32) {
    %c0_i32 = arith.constant 0 : i32
    %c0_i32_0 = arith.constant 0 : i32
    %c0_i32_1 = arith.constant 0 : i32
    return %arg0, %c0_i32, %c0_i32_0 : i32, i32, i32
  }
}

</mosaic_0001>

<bundles_post_ra>
// kernel: tpu_custom_call.1
= control target key start
LH: loop header
LB: loop body
LE: loop exit
PB: predicated region body
PF: predicated region fallthrough
CT: control target
= control target key end

     0   :  { %8 = vsyncpa [#allocation3], 0  ;;  %s927_s0 = inlined_call_operand.hbm [shape: f32[2,64,64], index: 0, kind: input, shape index: {}]   ;;  %s928_s1 = inlined_call_operand.vmem [shape: f32[64,4], index: 1, kind: input, shape index: {}]   ;;  %s929_s2 = inlined_call_operand.vmem [shape: f32[4,64], index: 2, kind: input, shape index: {}]   ;;  %s930_s3 = inlined_call_operand.hbm [shape: f32[2,64,64], index: 3, kind: output, shape index: {}]  }
   0x1   :  { %10 = vsyncpa [#allocation3 + $0x1], 0 }
   0x2   :  { %11 = vsyncpa [#allocation4], 0 }
   0x3   :  { %13 = vsyncpa [#allocation4 + $0x1], 0  ;;  %s720_s12 = smov 0   ;;  %s722_s13 = smov 0  }
   0x4   :  { %s724_s14 = smov 0   ;;  %s726_s15 = smov 0  }
   0x5 LB: > { %s741_s16 = sadd.s32 4294967295, %s693_s15   ;;  %s511_s17 = sadd.s32 4294967294, %s693_s15   ;;  %s693_s15 = sphi %s726_s15, %s940_s15   ;;  %s689_s14 = sphi %s724_s14, %s939_s14   ;;  %s685_s13 = sphi %s722_s13, %s938_s13   ;;  %s681_s12 = sphi %s720_s12, %s937_s12  }
   0x6   : > { %s745_s18 = sadd.s32 1, %s693_s15   ;;  %s26_s19 = sadd.s32 1, %s689_s14 }
   0x7   : > { %s23_s20 = ssub.s32 %s693_s15, %s745_s18  ;;  %p33_p0 = scmp.ne.s32.totalorder %s689_s14, %s685_s13 }
   0x8   : > { %p24_p1 = scmp.eq.s32.totalorder %s23_s20, 0  ;;  %p34_p2 = scmp.eq.s32.totalorder %s693_s15, 0 }
   0x9   : > { %p39_p3 = scmp.ne.s32.totalorder %s685_s13, %s681_s12  ;;  %p40_p4 = scmp.eq.s32.totalorder %s741_s16, 0 }
   0xa   : > { %s757_s21 = scalar_select %p24_p1, %s689_s14, %s26_s19  }
   0xb   : > { %p759_p5 = por %p34_p2, %p33_p0  ;;  %p763_p6 = por %p40_p4, %p39_p3 }
   0xc   : > { %p105_p7 = scmp.eq.s32.totalorder %s741_s16, 1  ;;  %p111_p8 = scmp.eq.s32.totalorder %s511_s17, 1 }
   0xd   : > { %p543_p10 = scmp.lt.s32.totalorder %s693_s15, 2  ;;  %s137_s26 = sand.u32 1, %s689_s14  }
   0xe   : > { %p770_p11 = por %p105_p7, %p33_p0  ;;  %p774_p12 = por %p111_p8, %p39_p3 }
   0xf   : > { %s529_s27 = sshll.u32 %s693_s15, 6  ;;  %s514_s28 = sshll.u32 %s137_s26, 6 }
  0x10   : > { %s146_s4 = scalar_lea.hbm %s927_s0, %s529_s27  ;;  %s141_s6 = scalar_lea.vmem [#allocation2], %s514_s28 }
  0x11   : > { %s147_s5 = sshll.u32 %s146_s4, 4  ;;  %s149_s7 = sshll.u32 %s141_s6, 4  ;;  %s148_s5 = int_to_ptr.hbm [resolvable:$true] %s147_s5  ;;  %s150_s7 = int_to_ptr.vmem [resolvable:$true] %s149_s7 }
  0x12   : > { %p785_p13 = pnand %p543_p10, %p759_p5  ;;  %p517_p0 = scmp.ge.s32.totalorder %s693_s15, 1 }
  0x13   : > { %p157_p1 = scmp.lt.s32.totalorder %s693_s15, 3  ;;  %s138_s9 = scalar_lea.sflag [#allocation3], %s137_s26 }
  0x14   : > { %s597_s10 = sshra.s32 %s148_s5, 4  ;;  %p601_p3 = pneg %p785_p13  ;;  %s598_s10 = int_to_ptr.hbm [resolvable:$true] %s597_s10 }
  0x15   : > { %s599_s11 = scalar_lea.hbm %s598_s10, 64  ;;  %s604_s20 = scalar_lea.hbm %s927_s0, 128 }
  0x16   : > { %p600_p2 = scmp.ne.s32.totalorder %s598_s10, %s599_s11  ;;  %p605_p5 = scmp.lt.s32.totalorder %s598_s10, %s927_s0 }
  0x17   : > { %p606_p8 = scmp.lt.s32.totalorder %s604_s20, %s599_s11 }
  0x18   : > { %p602_p4 = pnand %p601_p3, %p600_p2 }
  0x19   : > { %p607_p10 = por %p606_p8, %p605_p5 }
  0x1a   : > { %p603_p7 = pneg %p602_p4 }
  0x1c   : > { %p608_p9 = pnand %p607_p10, %p603_p7 }
  0x1e   : > { %611 = shalt.err (!%p608_p9)
}
  0x1f   : > { %s695_s26 = smov 128   ;;  %s696_s28 = smov 8  }
  0x20   : > { %538 = dma.hbm_to_vmem [thread:$0]  (!%p785_p13), %s148_s5, 1024, %s150_s7, %s138_s9, %s695_s26, %s695_s26, %s696_s28  }
  0x21   : > { %p158_p2 = pnand %p517_p0, %p157_p1 }
  0x22   : > { %s806_s29 = sand.u32 (!%p158_p2), 1, %s685_s13  }
  0x23   : > { %161 = sbr.rel (%p158_p2) target bundleno = 618 (0x26a), region = 32  ;;  %s518_s30 = sshll.u32 (!%p158_p2), %s806_s29, 6 }
  0x24   : > { %s164_s4 = scalar_lea.sflag (!%p158_p2), [#allocation3], %s806_s29  ;;  %s167_s6 = scalar_lea.vmem (!%p158_p2), [#allocation2], %s518_s30 }
  0x28   : > { %672 = dma.done.wait (%p763_p6), %s164_s4, 1024  }
  0x29   : > { %674 = vsyncadd (%p763_p6), %s164_s4, 4294966272  ;;  %vm199_vm0 = vcmask 523264   ;;  %v816_v0 = vld [vmem:[%s167_s6] sm:$0xff]  ;;  %v818_v1 = vld [vmem:[%s167_s6 + $0x10] sm:$0xff]  ;;  %v697_v18 = vmov 64.0   ;;  %v255_v30 = vlaneseq  ;;  %vm260_vm2 = vcmask 130112  }
  0x2a   : > { %v820_v2 = vld [vmem:[%s167_s6 + $0x20] sm:$0xff]  ;;  %v200_v3 = vsel %vm199_vm0, %v816_v0, 0.0  ;;  %v206_v4 = vsel %vm199_vm0, %v818_v1, 0.0  ;;  %v828_v6 = vld [vmem:[%s167_s6 + $0x8] sm:$0xff]  ;;  %v830_v7 = vld [vmem:[%s167_s6 + $0x18] sm:$0xff]  ;;  %591 = vrcp.f32 %v697_v18  ;;  %vm264_vm3 = vcmask 195712  }
  0x2b   : > { %v212_v5 = vsel %vm199_vm0, %v820_v2, 0.0  ;;  %201 = vadd.xlane.f32.xlu0 %v200_v3  ;;  %207 = vadd.xlane.f32.xlu1 %v206_v4  ;;  %v832_v8 = vld [vmem:[%s167_s6 + $0x28] sm:$0xff]  ;;  %v203_v9 = vsel %vm199_vm0, %v828_v6, 0.0  ;;  %v209_v10 = vsel %vm199_vm0, %v830_v7, 0.0  ;;  %v840_v12 = vld [vmem:[%s167_s6 + $0x30] sm:$0xff]  ;;  %v842_v13 = vld [vmem:[%s167_s6 + $0x38] sm:$0xff] }
  0x2c   : > { %213 = vadd.xlane.f32.xlu2 %v212_v5  ;;  %v215_v11 = vsel %vm199_vm0, %v832_v8, 0.0  ;;  %v218_v14 = vsel %vm199_vm0, %v840_v12, 0.0  ;;  %v221_v15 = vsel %vm199_vm0, %v842_v13, 0.0  ;;  %v246_v16 = vld [vmem:[%s928_s1 + $0x38] sm:$0xff]  ;;  %v245_v17 = vld [vmem:[%s928_s1 + $0x30] sm:$0xff]  ;;  %v244_v19 = vld [vmem:[%s928_s1 + $0x28] sm:$0xff] }
  0x2d   : > { %296 = vmatpush.msra.mxu0 %v246_v16  ;;  %v243_v20 = vld [vmem:[%s928_s1 + $0x20] sm:$0xff]  ;;  %v242_v21 = vld [vmem:[%s928_s1 + $0x18] sm:$0xff]  ;;  %v241_v23 = vld [vmem:[%s928_s1 + $0x10] sm:$0xff]  ;;  %v256_v35 = vand.u32 127, %v255_v30  ;;  %vm268_vm4 = vcmask 261312   ;;  %vm272_vm5 = vcmask 326912  }
  0x2e   : > { %v240_v24 = vld [vmem:[%s928_s1 + $0x8] sm:$0xff]  ;;  %v239_v25 = vld [vmem:[%s928_s1] sm:$0xff]  ;;  %vm276_vm6 = vcmask 392512   ;;  %vm280_vm7 = vcmask 458112   ;;  %vm284_vm8 = vcmask 523712   ;;  %vm314_vm9 = vcmask 1043456  }
  0x2f   : > { %297 = vmatpush.msra.mxu0 %v245_v17  ;;  %v258_v37 = vadd.s32 4294967288, %v256_v35  ;;  %v266_v38 = vadd.s32 4294967272, %v256_v35  ;;  %v262_v39 = vadd.s32 4294967280, %v256_v35  ;;  %v270_v46 = vadd.s32 4294967264, %v256_v35  ;;  %s190_s7 = scalar_lea.vmem [#allocation5], %s518_s30  ;;  %s530_s30 = sshll.u32 %s741_s16, 6 }
  0x30   : > { %v592_v22 = vpop.eup %591  ;;  %v274_v52 = vadd.s32 4294967256, %v256_v35  ;;  %v278_v58 = vadd.s32 4294967248, %v256_v35  ;;  %v282_v59 = vadd.s32 4294967240, %v256_v35  ;;  %vm310_vm10 = vcmask 31744   ;;  %s434_s10 = scalar_lea.hbm %s930_s3, %s530_s30  ;;  %s435_s11 = sshll.u32 %s190_s7, 4  ;;  %s436_s11 = int_to_ptr.vmem [resolvable:$true] %s435_s11 }
  0x31   : > { %298 = vmatpush.msra.mxu0 %v244_v19  ;;  %v225_v26 = vmul.f32 64.0, %v592_v22  ;;  %vm229_vm1 = vweird.f32 %v592_v22  ;;  %v359_v18 = vshrl.u32 %v255_v30, 7  ;;  %s437_s17 = sshll.u32 %s434_s10, 4  ;;  %s423_s16 = scalar_lea.sflag [#allocation4], %s806_s29  ;;  %s438_s17 = int_to_ptr.hbm [resolvable:$true] %s437_s17 }
  0x32   : > { %s641_s19 = sshra.s32 %s438_s17, 4  ;;  %s647_s26 = scalar_lea.hbm %s930_s3, 128  ;;  %s642_s19 = int_to_ptr.hbm [resolvable:$true] %s641_s19 }
  0x33   : > { %204 = vadd.xlane.f32.xlu0 %v203_v9  ;;  %210 = vadd.xlane.f32.xlu1 %v209_v10  ;;  %v226_v27 = vsub.f32 1.0, %v225_v26  ;;  %v372_v19 = vadd.s32 16, %v359_v18  ;;  %s643_s20 = scalar_lea.hbm %s642_s19, 64  ;;  %p648_p0 = scmp.lt.s32.totalorder %s642_s19, %s930_s3 }
  0x34   : > { %216 = vadd.xlane.f32.xlu2 %v215_v11  ;;  %299 = vmatpush.msra.mxu0 %v243_v20  ;;  %v366_v20 = vadd.s32 8, %v359_v18  ;;  %p644_p6 = scmp.ne.s32.totalorder %s642_s19, %s643_s20  ;;  %p649_p1 = scmp.lt.s32.totalorder %s647_s26, %s643_s20 }
  0x35   : > { %v227_v28 = vmul.f32 %v592_v22, %v226_v27  ;;  %582 = vset.pattern.permute.xlu2 %v359_v18  ;;  %584 = vset.pattern.permute.xlu1 %v372_v19 }
  0x36   : > { %300 = vmatpush.msra.mxu0 %v242_v21  ;;  %583 = vset.pattern.permute.xlu0 %v366_v20  ;;  %p645_p9 = pnand %p644_p6, %p770_p11  ;;  %p650_p3 = por %p649_p1, %p648_p0 }
  0x37   : > { %v228_v29 = vadd.f32 %v592_v22, %v227_v28 }
  0x38   : > { %301 = vmatpush.msra.mxu0 %v241_v23  ;;  %p646_p13 = pneg %p645_p9 }
  0x39   : > { %v230_v34 = vsel %vm229_vm1, %v592_v22, %v228_v29 }
  0x3a   : > { %302 = vmatpush.msra.mxu0 %v240_v24  ;;  %p651_p4 = pnand %p650_p3, %p646_p13 }
  0x3b   : > { %219 = vadd.xlane.f32.xlu0 %v218_v14  ;;  %222 = vadd.xlane.f32.xlu1 %v221_v15  ;;  %v309_v15 = vld [vmem:[%s929_s2] sm:$0xf] }
  0x3c   : > { %303 = vmatpush.msra.mxu0 %v239_v25  ;;  %521 = vmatpush.msk.msra.mxu1 %vm314_vm9, %v309_v15 }
  0x9e   : > { %v202_v31 = vpop.xlane.xlu0 %201  ;;  %v208_v32 = vpop.xlane.xlu1 %207 }
  0x9f   : > { %v214_v33 = vpop.xlane.xlu2 %213  ;;  %v231_v36 = vmul.f32 %v230_v34, %v202_v31  ;;  %v233_v40 = vmul.f32 %v230_v34, %v208_v32 }
  0xa0   : > { %v235_v48 = vmul.f32 %v230_v34, %v214_v33 }
  0xa1   : > { %v257_v47 = vperm.slane %v231_v36, %v256_v35  ;;  %v263_v51 = vperm.slane %v233_v40, %v262_v39  ;;  %v390_v36 = vadd.s32 40, %v359_v18  ;;  %v384_v39 = vadd.s32 32, %v359_v18 }
  0xa2   : > { %v271_v56 = vperm.slane %v235_v48, %v270_v46  ;;  %v396_v40 = vadd.s32 48, %v359_v18 }
  0xa6   : > { %v205_v41 = vpop.xlane.xlu0 %204  ;;  %v211_v42 = vpop.xlane.xlu1 %210 }
  0xa7   : > { %v232_v43 = vmul.f32 %v230_v34, %v205_v41  ;;  %v234_v44 = vmul.f32 %v230_v34, %v211_v42  ;;  %v217_v45 = vpop.xlane.xlu2 %216 }
  0xa8   : > { %v236_v53 = vmul.f32 %v230_v34, %v217_v45 }
  0xa9   : > { %v259_v49 = vperm.slane %v232_v43, %v258_v37  ;;  %v267_v50 = vperm.slane %v234_v44, %v266_v38  ;;  %v378_v37 = vadd.s32 24, %v359_v18  ;;  %v402_v38 = vadd.s32 56, %v359_v18 }
  0xaa   : > { %v275_v60 = vperm.slane %v236_v53, %v274_v52 }
  0xab   : > { %v261_v54 = vsel %vm260_vm2, %v259_v49, %v257_v47 }
  0xac   : > { %v265_v55 = vsel %vm264_vm3, %v263_v51, %v261_v54 }
  0xad   : > { %v269_v57 = vsel %vm268_vm4, %v267_v50, %v265_v55 }
  0xae   : > { %v220_v61 = vpop.xlane.xlu0 %219  ;;  %v223_v62 = vpop.xlane.xlu1 %222  ;;  %v273_v4 = vsel %vm272_vm5, %v271_v56, %v269_v57 }
  0xaf   : > { %v237_v63 = vmul.f32 %v230_v34, %v220_v61  ;;  %v238_v3 = vmul.f32 %v230_v34, %v223_v62  ;;  %v277_v10 = vsel %vm276_vm6, %v275_v60, %v273_v4 }
  0xb1   : > { %v279_v5 = vperm.slane %v237_v63, %v278_v58  ;;  %v283_v9 = vperm.slane %v238_v3, %v282_v59 }
  0xb3   : > { %v281_v11 = vsel %vm280_vm7, %v279_v5, %v277_v10 }
  0xb4   : > { %v285_v14 = vsel %vm284_vm8, %v283_v9, %v281_v11 }
  0xb5   : > { %520 = vmatmul.msk.f32.vlgmr.msra.gmra.mxu0 %vm199_vm0, %v285_v14 }
 0x132   : > { %v305_v16 = vpop.f32.mrf.mxu0 }
 0x133   : > { %v308_v17 = vmax.f32 %v305_v16, 0.0 }
 0x135   : > { %522 = vmatmul.msk.f32.vlgmr.msra.gmra.mxu1 %vm310_vm10, %v308_v17 }
 0x1b2   : > { %v335_v21 = vpop.f32.mrf.mxu1 }
 0x1b3   : > { %v523_v22 = vmul.f32 -1.442695, %v335_v21 }
 0x1b5   : > { %593 = vpow2.f32 %v523_v22 }
 0x1bb   : > { %v594_v23 = vpop.eup %593 }
 0x1bc   : > { %v341_v24 = vadd.f32 1.0, %v594_v23 }
 0x1be   : > { %595 = vrcp.f32 %v341_v24  ;;  %v353_v28 = vand.u32 2147483648, %v341_v24  ;;  %v351_v31 = vand.u32 2147483647, %v341_v24  ;;  %vm347_vm12 = vweird.f32 %v341_v24 }
 0x1c0   : > { %v354_v30 = vor.u32 1.1754944e-38, %v353_v28  ;;  %vm352_vm14 = vcmp.eq.f32.partialorder %v351_v31, 8.507059e+37 }
 0x1c4   : > { %v596_v25 = vpop.eup %595 }
 0x1c5   : > { %v343_v26 = vmul.f32 %v596_v25, %v341_v24  ;;  %vm348_vm11 = vweird.f32 %v596_v25 }
 0x1c6   : > { %vm349_vm13 = vmor %vm347_vm12, %vm348_vm11 }
 0x1c7   : > { %v344_v27 = vsub.f32 1.0, %v343_v26 }
 0x1c9   : > { %v345_v29 = vmul.f32 %v596_v25, %v344_v27 }
 0x1cb   : > { %v346_v32 = vadd.f32 %v596_v25, %v345_v29 }
 0x1cd   : > { %v350_v33 = vsel %vm349_vm13, %v596_v25, %v346_v32 }
 0x1ce   : > { %v355_v34 = vsel %vm352_vm14, %v354_v30, %v350_v33 }
 0x1cf   : > { %v357_v35 = vperm.slane %v355_v34, 0 }
 0x1d1   : > { %374 = vperm.xlu1 %584, %v357_v35   ;;  %368 = vperm.xlu0 %583, %v357_v35  }
 0x1d2   : > { %362 = vperm.xlu2 %582, %v357_v35  }
 0x1d9   : > { %587 = vset.pattern.permute.xlu1 %v390_v36  ;;  %590 = vset.pattern.permute.xlu0 %v402_v38 }
 0x1da   : > { %585 = vset.pattern.permute.xlu2 %v378_v37 }
 0x1e1   : > { %392 = vperm.xlu1 %587, %v357_v35  }
 0x1e2   : > { %380 = vperm.xlu2 %585, %v357_v35  }
 0x1e9   : > { %589 = vset.pattern.permute.xlu1 %v402_v38 }
 0x1ea   : > { %586 = vset.pattern.permute.xlu2 %v384_v39 }
 0x1f1   : > { %404 = vperm.xlu1 %589, %v357_v35  }
 0x1f2   : > { %386 = vperm.xlu2 %586, %v357_v35  }
 0x1fa   : > { %588 = vset.pattern.permute.xlu2 %v396_v40 }
 0x202   : > { %398 = vperm.xlu2 %588, %v357_v35  }
 0x22c   : > { %v363_v41 = vpop.permute.xlu2 %362 }
 0x22d   : > { %v406_v42 = vmul.f32 %v363_v41, %v816_v0 }
 0x22f   : > { %414 = vst.msk [vmem:[%s190_s7] sm:$0xff] %vm199_vm0, %v406_v42 }
 0x23c   : > { %v381_v43 = vpop.permute.xlu2 %380 }
 0x23d   : > { %v409_v44 = vmul.f32 %v381_v43, %v830_v7 }
 0x23f   : > { %417 = vst.msk [vmem:[%s190_s7 + $0x18] sm:$0xff] %vm199_vm0, %v409_v44 }
 0x243   : > { %v375_v45 = vpop.permute.xlu1 %374  ;;  %v369_v46 = vpop.permute.xlu0 %368 }
 0x244   : > { %v408_v47 = vmul.f32 %v375_v45, %v818_v1  ;;  %v407_v48 = vmul.f32 %v369_v46, %v828_v6 }
 0x246   : > { %416 = vst.msk [vmem:[%s190_s7 + $0x10] sm:$0xff] %vm199_vm0, %v408_v47 }
 0x247   : > { %415 = vst.msk [vmem:[%s190_s7 + $0x8] sm:$0xff] %vm199_vm0, %v407_v48 }
 0x24c   : > { %v387_v0 = vpop.permute.xlu2 %386 }
 0x24d   : > { %v410_v49 = vmul.f32 %v387_v0, %v820_v2 }
 0x24f   : > { %418 = vst.msk [vmem:[%s190_s7 + $0x20] sm:$0xff] %vm199_vm0, %v410_v49 }
 0x253   : > { %v393_v50 = vpop.permute.xlu1 %392 }
 0x254   : > { %v411_v7 = vmul.f32 %v393_v50, %v832_v8 }
 0x256   : > { %419 = vst.msk [vmem:[%s190_s7 + $0x28] sm:$0xff] %vm199_vm0, %v411_v7 }
 0x25c   : > { %v399_v51 = vpop.permute.xlu2 %398 }
 0x25d   : > { %v412_v1 = vmul.f32 %v399_v51, %v840_v12 }
 0x25f   : > { %420 = vst.msk [vmem:[%s190_s7 + $0x30] sm:$0xff] %vm199_vm0, %v412_v1 }
 0x263   : > { %v405_v2 = vpop.permute.xlu1 %404 }
 0x264   : > { %v413_v6 = vmul.f32 %v405_v2, %v842_v13 }
 0x266   : > { %421 = vst.msk [vmem:[%s190_s7 + $0x38] sm:$0xff] %vm199_vm0, %v413_v6 }
 0x267   : > { %654 = shalt.err (!%p651_p4)
}
 0x268   : > { %s698_s29 = smov 128   ;;  %s699_s6 = smov 8  }
 0x269   : > { %533 = dma.vmem_to_hbm [thread:$0]  (%p770_p11), %s436_s11, 1024, %s438_s17, %s423_s16, %s698_s29, %s698_s29, %s699_s6  }
 0x26a PF: > { %s452_s23 = sand.u32 1, %s681_s12   ;;  %p936_p7 = scmp.ge.s32.totalorder %s693_s15, 2 }
 0x26b   : > { %s453_s5 = scalar_lea.sflag [#allocation4], %s452_s23 }
 0x26c   : > { %p540_p5 = pnand %p936_p7, %p774_p12 }
 0x26e   : > { %p541_p8 = pneg %p540_p5 }
 0x270   : > { %676 = dma.done.wait (%p541_p8), %s453_s5, 1024  }
 0x271   : > { %678 = vsyncadd (%p541_p8), %s453_s5, 4294966272  ;;  %p16_p10 = scmp.ge.s32.totalorder %s745_s18, 4   ;;  %s937_s12 = smov %s685_s13 }
 0x272   : > { %s938_s13 = smov %s689_s14  ;;  %s939_s14 = smov %s757_s21 }
 0x273   : > { %s940_s15 = smov %s745_s18  ;;  %18 = sbr.rel (!%p16_p10) target bundleno = 5 (0x5), region = 77 }
 0x278   :  { %459 = vsyncpa [#allocation3], 1 }
 0x279   :  { %461 = vsyncpa [#allocation3 + $0x1], 1 }
 0x27a   :  { %462 = vsyncpa [#allocation4], 1 }
 0x27b   :  { %464 = vsyncpa [#allocation4 + $0x1], 1 }

</bundles_post_ra>
